<compile_context>
chip_gen: v5e
topology: v5e:2x2
jax: 0.10.0
libtpu: 0.0.40
codegen_flags: <defaults>
</compile_context>

<pallas_src>
import functools

import jax
import jax.numpy as jnp
from jax.experimental import pallas as pl
from jax.experimental.pallas import tpu as pltpu


_TARGET_TILE_BYTES = 2 * 1024 * 1024   # ~2 MiB per input tile (85%+ roofline)
_VMEM_BUDGET_BYTES = 24 * 1024 * 1024  # 3 inputs x 2 pipeline buffers budget


def _pick_tile_rows(total_rows, row_bytes):
    """Largest row-tile (multiple of 8, or full extent if tiny) by byte budget."""
    if total_rows <= 8:
        return total_rows
    tb = max(1, _TARGET_TILE_BYTES // row_bytes)
    tb_budget = max(1, _VMEM_BUDGET_BYTES // (3 * 2 * row_bytes))
    tb = min(tb, tb_budget, total_rows)
    return max(8, (tb // 8) * 8)


def _vmem_limit(tile_bytes):
    """3 inputs x 2 buffers + headroom, clamped well under v7x's 64 MiB VMEM."""
    need = 3 * 2 * tile_bytes + (4 << 20)
    return int(min(48 << 20, max(16 << 20, need)))


# ---------------------------------------------------------------------------
# Kernels
# ---------------------------------------------------------------------------
def _spoplus_rows_kernel(cp_ref, c_ref, w_ref, z_ref, loss_ref):
    """Per-sample SPO+ loss for one (TB, D) tile -> (TB, 1) f32.

    loss_row = -obj + 2*<cp,w> - z
             = sum_j max(c - 2*cp, 0) + sum_j 2*cp*w - z   (single fused reduce)
    Out-of-range rows of an edge tile compute garbage but their stores are
    dropped by Pallas, so no in-kernel mask is needed here.
    """
    cp = cp_ref[...].astype(jnp.float32)
    c = c_ref[...].astype(jnp.float32)
    w = w_ref[...].astype(jnp.float32)
    z = z_ref[...].astype(jnp.float32)

    t = 2.0 * cp
    combined = t * w + jnp.maximum(c - t, 0.0)                     # (TB, D)
    loss_ref[...] = (jnp.sum(combined, axis=1, keepdims=True) - z).astype(
        loss_ref.dtype)


def _spoplus_flat_sum_kernel(cp_ref, c_ref, w_ref, acc_ref, *,
                             tile_rows, rows_total, tiles_per_core,
                             total_batch):
    """Global sum of the fused per-element term over a lane-dense flat view.

    Inputs are (tile_rows, 128) tiles of the flattened (B*D/128, 128) arrays.
    Each TensorCore `p` owns its own resident (1, 1) accumulator row; rows
    past `rows_total` (edge tile / over-assigned core) are masked to zero
    because out-of-bounds block reads are undefined.
    """
    del total_batch  # only used for cost bookkeeping at trace time
    p = pl.program_id(0)
    i = pl.program_id(1)

    @pl.when(i == 0)
    def _():
        acc_ref[...] = jnp.zeros_like(acc_ref)

    cp = cp_ref[...].astype(jnp.float32)
    c = c_ref[...].astype(jnp.float32)
    w = w_ref[...].astype(jnp.float32)

    t = 2.0 * cp
    combined = t * w + jnp.maximum(c - t, 0.0)                     # (tr, 128)

    # Mask rows that fall outside the real array (uses the UNclamped index so
    # fully-out-of-range tiles contribute exactly zero).
    row_start = (p * tiles_per_core + i) * tile_rows
    row_ids = row_start + jax.lax.broadcasted_iota(jnp.int32, combined.shape, 0)
    combined = jnp.where(row_ids < rows_total, combined, 0.0)

    acc_ref[...] += jnp.sum(combined, keepdims=True)               # (1, 1)


# ---------------------------------------------------------------------------
# Wrapper
# ---------------------------------------------------------------------------
def spoplus_loss(pred_cost, true_cost, true_sol, true_obj, reduction="mean"):
    """SPO+ loss (MINIMIZE sense, box-LP OptModel) via Pallas TPU kernels."""
    if reduction not in ("mean", "sum", "none"):
        raise ValueError("No reduction '{}'.".format(reduction))

    B, D = pred_cost.shape
    assert true_cost.shape == (B, D)
    assert true_sol.shape == (B, D)
    assert true_obj.shape == (B, 1)

    itemsize = jnp.dtype(pred_cost.dtype).itemsize

    # ---- mean / sum: lane-dense flat reduction (independent of D) ----------
    if reduction in ("mean", "sum") and (B * D) % 128 == 0:
        rows_total = (B * D) // 128
        cp_flat = pred_cost.reshape(rows_total, 128)
        c_flat = true_cost.reshape(rows_total, 128)
        w_flat = true_sol.reshape(rows_total, 128)

        tr = _pick_tile_rows(rows_total, 128 * itemsize)
        tiles_total = pl.cdiv(rows_total, tr)
        num_cores = 2 if tiles_total >= 2 else 1   # use both TCs on v7x
        tiles_per_core = pl.cdiv(tiles_total, num_cores)
        tile_bytes = tr * 128 * itemsize

        def in_map(p, i):
            blk = p * tiles_per_core + i
            # Clamp so over-assigned core iterations stay in bounds; their
            # contribution is masked to zero inside the kernel.
            return (jnp.minimum(blk, tiles_total - 1), 0)

        kernel = functools.partial(
            _spoplus_flat_sum_kernel,
            tile_rows=tr, rows_total=rows_total,
            tiles_per_core=tiles_per_core, total_batch=B)

        partials = pl.pallas_call(
            kernel,
            out_shape=jax.ShapeDtypeStruct((num_cores, 1), jnp.float32),
            grid=(num_cores, tiles_per_core),
            in_specs=[
                pl.BlockSpec((tr, 128), in_map),
                pl.BlockSpec((tr, 128), in_map),
                pl.BlockSpec((tr, 128), in_map),
            ],
            out_specs=pl.BlockSpec((1, 1), lambda p, i: (p, 0)),
            compiler_params=pltpu.CompilerParams(
                dimension_semantics=("parallel", "arbitrary"),
                vmem_limit_bytes=_vmem_limit(tile_bytes),
            ),
            cost_estimate=pl.CostEstimate(
                flops=6 * B * D,
                transcendentals=0,
                bytes_accessed=3 * B * D * itemsize + num_cores * 4,
            ),
        )(cp_flat, c_flat, w_flat)

        total = jnp.sum(partials) - jnp.sum(true_obj.astype(jnp.float32))
        if reduction == "mean":
            return total / jnp.float32(B)
        return total

    # ---- per-row kernel: 'none', or mean/sum fallback when B*D % 128 != 0 --
    tb = _pick_tile_rows(B, D * itemsize)
    num_tiles = pl.cdiv(B, tb)
    tile_bytes = tb * D * itemsize

    per_sample = pl.pallas_call(
        _spoplus_rows_kernel,
        out_shape=jax.ShapeDtypeStruct((B, 1), jnp.float32),
        grid=(num_tiles,),
        in_specs=[
            pl.BlockSpec((tb, D), lambda i: (i, 0)),
            pl.BlockSpec((tb, D), lambda i: (i, 0)),
            pl.BlockSpec((tb, D), lambda i: (i, 0)),
            pl.BlockSpec((tb, 1), lambda i: (i, 0)),
        ],
        out_specs=pl.BlockSpec((tb, 1), lambda i: (i, 0)),
        compiler_params=pltpu.CompilerParams(
            dimension_semantics=("parallel",),
            vmem_limit_bytes=_vmem_limit(tile_bytes),
        ),
        cost_estimate=pl.CostEstimate(
            flops=6 * B * D,
            transcendentals=0,
            bytes_accessed=3 * B * D * itemsize + 2 * B * 4,
        ),
    )(pred_cost, true_cost, true_sol, true_obj)

    if reduction == "none":
        return per_sample
    elif reduction == "mean":
        # Tiny XLA reduce over B elements; negligible vs the 3*B*D input pass.
        return jnp.mean(per_sample)
    else:  # "sum"
        return jnp.sum(per_sample)


# ---------------------------------------------------------------------------
# Reference + self-test
# ---------------------------------------------------------------------------
def _reference_rows(pred_cost, true_cost, true_sol, true_obj):
    c_hat = 2.0 * pred_cost - true_cost
    obj = jnp.sum(jnp.minimum(c_hat, 0.0), axis=1, keepdims=True)
    return (-obj + 2.0 * jnp.sum(pred_cost * true_sol, axis=1, keepdims=True)
            - true_obj)


def _make_inputs(key, B, D):
    k1, k2 = jax.random.split(key)
    pred_cost = jax.random.normal(k1, (B, D), dtype=jnp.float32)
    true_cost = jax.random.normal(k2, (B, D), dtype=jnp.float32)
    # true optimal solution / objective for the box-LP MINIMIZE OptModel
    true_sol = (true_cost < 0.0).astype(jnp.float32)
    true_obj = jnp.sum(jnp.minimum(true_cost, 0.0), axis=1, keepdims=True)
    return pred_cost, true_cost, true_sol, true_obj


def _check_case(key, B, D):
    pred_cost, true_cost, true_sol, true_obj = _make_inputs(key, B, D)
    ref_rows = _reference_rows(pred_cost, true_cost, true_sol, true_obj)

    loss_mean = jax.block_until_ready(
        spoplus_loss(pred_cost, true_cost, true_sol, true_obj, "mean"))
    loss_sum = jax.block_until_ready(
        spoplus_loss(pred_cost, true_cost, true_sol, true_obj, "sum"))
    loss_none = jax.block_until_ready(
        spoplus_loss(pred_cost, true_cost, true_sol, true_obj, "none"))

    assert jnp.allclose(loss_mean, jnp.mean(ref_rows), rtol=1e-5, atol=1e-5), \
        (B, D, loss_mean, jnp.mean(ref_rows))
    assert jnp.allclose(loss_sum, jnp.sum(ref_rows), rtol=1e-5, atol=1e-5), \
        (B, D, loss_sum, jnp.sum(ref_rows))
    assert loss_none.shape == (B, 1)
    assert jnp.allclose(loss_none, ref_rows, rtol=1e-5, atol=1e-5), (B, D)


if __name__ == "__main__":
    key = jax.random.PRNGKey(0)
    k_a, k_b = jax.random.split(key)

    # Case 1: B*D divisible by 128 -> lane-dense flat sum path + rows path.
    _check_case(k_a, B=8, D=32)

    # Case 2: ragged batch, B*D not divisible by 128 -> edge tiles (no pad)
    # and the mean/sum fallback through the per-row kernel.
    _check_case(k_b, B=13, D=24)

    print("KERNEL_OK")
</pallas_src>

<mosaic_0001>
module attributes {stable_mosaic.version = 11 : i64} {
  func.func @_spoplus_flat_sum_kernel(%arg0: i32, %arg1: i32, %arg2: memref<2x128xf32, #tpu.memory_space<vmem>>, %arg3: memref<2x128xf32, #tpu.memory_space<vmem>>, %arg4: memref<2x128xf32, #tpu.memory_space<vmem>>, %arg5: memref<1x1xf32, #tpu.memory_space<vmem>>) attributes {dimension_semantics = [#tpu.dimension_semantics<parallel>, #tpu.dimension_semantics<arbitrary>], iteration_bounds = array<i64: 1, 1>, scalar_prefetch = 0 : i64, scratch_operands = 0 : i64, tpu.core_type = #tpu.core_type<tc>, window_params = [{transform_indices = @transform_0, window_bounds = array<i64: 2, 128>}, {transform_indices = @transform_1, window_bounds = array<i64: 2, 128>}, {transform_indices = @transform_2, window_bounds = array<i64: 2, 128>}, {transform_indices = @transform_3, window_bounds = array<i64: 1, 1>}]} {
    %c0_i32 = arith.constant 0 : i32
    %0 = arith.cmpi eq, %arg1, %c0_i32 : i32
    %1 = arith.extui %0 : i1 to i32
    %c0_i32_0 = arith.constant 0 : i32
    %2 = arith.cmpi ne, %1, %c0_i32_0 : i32
    scf.if %2 {
      %cst_14 = arith.constant 0.000000e+00 : f32
      %31 = vector.broadcast %cst_14 : f32 to vector<1x1xf32>
      %c0_15 = arith.constant 0 : index
      %c0_16 = arith.constant 0 : index
      %32 = vector.load %arg5[%c0_15, %c0_16] : memref<1x1xf32, #tpu.memory_space<vmem>>, vector<1x1xf32>
      tpu.vector_store %arg5[%c0_15, %c0_16], %31 {strides = array<i32>} : memref<1x1xf32, #tpu.memory_space<vmem>>, vector<1x1xf32>,
    } else {
    }
    %c0 = arith.constant 0 : index
    %c0_1 = arith.constant 0 : index
    %3 = vector.load %arg2[%c0, %c0_1] : memref<2x128xf32, #tpu.memory_space<vmem>>, vector<2x128xf32>
    %c0_2 = arith.constant 0 : index
    %c0_3 = arith.constant 0 : index
    %4 = vector.load %arg3[%c0_2, %c0_3] : memref<2x128xf32, #tpu.memory_space<vmem>>, vector<2x128xf32>
    %c0_4 = arith.constant 0 : index
    %c0_5 = arith.constant 0 : index
    %5 = vector.load %arg4[%c0_4, %c0_5] : memref<2x128xf32, #tpu.memory_space<vmem>>, vector<2x128xf32>
    %cst = arith.constant 2.000000e+00 : f32
    %6 = vector.broadcast %cst : f32 to vector<2x128xf32>
    %7 = arith.mulf %6, %3 : vector<2x128xf32>
    %8 = arith.mulf %7, %5 : vector<2x128xf32>
    %9 = arith.subf %4, %7 : vector<2x128xf32>
    %cst_6 = arith.constant 0.000000e+00 : f32
    %10 = vector.broadcast %cst_6 : f32 to vector<2x128xf32>
    %11 = arith.maximumf %9, %10 : vector<2x128xf32>
    %12 = arith.addf %8, %11 : vector<2x128xf32>
    %c1_i32 = arith.constant 1 : i32
    %13 = arith.muli %arg0, %c1_i32 : i32
    %14 = arith.addi %13, %arg1 : i32
    %c2_i32 = arith.constant 2 : i32
    %15 = arith.muli %14, %c2_i32 : i32
    %16 = tpu.iota {dimensions = array<i32: 0>} : vector<2x128xi32>
    %17 = vector.broadcast %15 : i32 to vector<2x128xi32>
    %18 = arith.addi %17, %16 : vector<2x128xi32>
    %c2_i32_7 = arith.constant 2 : i32
    %19 = vector.broadcast %c2_i32_7 : i32 to vector<2x128xi32>
    %20 = arith.cmpi slt, %18, %19 : vector<2x128xi32>
    %cst_8 = arith.constant 0.000000e+00 : f32
    %21 = vector.broadcast %cst_8 : f32 to vector<2x128xf32>
    %22 = arith.select %20, %12, %21 : vector<2x128xi1>, vector<2x128xf32>
    %c0_9 = arith.constant 0 : index
    %c0_10 = arith.constant 0 : index
    %23 = vector.load %arg5[%c0_9, %c0_10] : memref<1x1xf32, #tpu.memory_space<vmem>>, vector<1x1xf32>
    %24 = vector.shape_cast %22 : vector<2x128xf32> to vector<1x2x128xf32>
    %cst_11 = arith.constant dense<0.000000e+00> : vector<1xf32>
    %25 = vector.multi_reduction <add>, %24, %cst_11 [1, 2] : vector<1x2x128xf32> to vector<1xf32>
    %26 = vector.shape_cast %25 : vector<1xf32> to vector<1x1x1xf32>
    %27 = vector.extract %26[0, 0, 0] : f32 from vector<1x1x1xf32>
    %28 = vector.broadcast %27 : f32 to vector<1x1xf32>
    %29 = arith.addf %23, %28 : vector<1x1xf32>
    %c0_12 = arith.constant 0 : index
    %c0_13 = arith.constant 0 : index
    %30 = vector.load %arg5[%c0_12, %c0_13] : memref<1x1xf32, #tpu.memory_space<vmem>>, vector<1x1xf32>
    tpu.vector_store %arg5[%c0_12, %c0_13], %29 {strides = array<i32>} : memref<1x1xf32, #tpu.memory_space<vmem>>, vector<1x1xf32>,
    return
  }
  func.func @transform_0(%arg0: i32, %arg1: i32) -> (i32, i32) {
    %c1_i32 = arith.constant 1 : i32
    %0 = arith.muli %arg0, %c1_i32 : i32
    %1 = arith.addi %0, %arg1 : i32
    %c0_i32 = arith.constant 0 : i32
    %2 = arith.minsi %1, %c0_i32 : i32
    %c0_i32_0 = arith.constant 0 : i32
    %c0_i32_1 = arith.constant 0 : i32
    return %2, %c0_i32_0 : i32, i32
  }
  func.func @transform_1(%arg0: i32, %arg1: i32) -> (i32, i32) {
    %c1_i32 = arith.constant 1 : i32
    %0 = arith.muli %arg0, %c1_i32 : i32
    %1 = arith.addi %0, %arg1 : i32
    %c0_i32 = arith.constant 0 : i32
    %2 = arith.minsi %1, %c0_i32 : i32
    %c0_i32_0 = arith.constant 0 : i32
    %c0_i32_1 = arith.constant 0 : i32
    return %2, %c0_i32_0 : i32, i32
  }
  func.func @transform_2(%arg0: i32, %arg1: i32) -> (i32, i32) {
    %c1_i32 = arith.constant 1 : i32
    %0 = arith.muli %arg0, %c1_i32 : i32
    %1 = arith.addi %0, %arg1 : i32
    %c0_i32 = arith.constant 0 : i32
    %2 = arith.minsi %1, %c0_i32 : i32
    %c0_i32_0 = arith.constant 0 : i32
    %c0_i32_1 = arith.constant 0 : i32
    return %2, %c0_i32_0 : i32, i32
  }
  func.func @transform_3(%arg0: i32, %arg1: i32) -> (i32, i32) {
    %c0_i32 = arith.constant 0 : i32
    %c0_i32_0 = arith.constant 0 : i32
    return %arg0, %c0_i32 : i32, i32
  }
}

</mosaic_0001>

<bundles_post_ra>
// kernel: tpu_custom_call.1
= control target key start
LH: loop header
LB: loop body
LE: loop exit
PB: predicated region body
PF: predicated region fallthrough
CT: control target
= control target key end

     0   :  { %8 = vsyncpa [#allocation3], 0  ;;  %s290_s0 = inlined_call_operand.hbm [shape: f32[2,128], index: 0, kind: input, shape index: {}]   ;;  %s291_s1 = inlined_call_operand.hbm [shape: f32[2,128], index: 1, kind: input, shape index: {}]   ;;  %s292_s2 = inlined_call_operand.hbm [shape: f32[2,128], index: 2, kind: input, shape index: {}]   ;;  %s293_s3 = inlined_call_operand.hbm [shape: f32[1,1], index: 3, kind: output, shape index: {}]  }
   0x1   :  { %9 = vsyncpa [#allocation6], 0  ;;  %s37_s14 = sshll.u32 %s291_s1, 4  ;;  %s38_s14 = int_to_ptr.hbm [resolvable:$true] %s37_s14 }
   0x2   :  { %10 = vsyncpa [#allocation4], 0  ;;  %s251_s15 = smov [#allocation5]   ;;  %s21_s19 = sshll.u32 %s290_s0, 4  ;;  %s22_s19 = int_to_ptr.hbm [resolvable:$true] %s21_s19 }
   0x3   :  { %s39_s16 = sshll.u32 %s251_s15, 4  ;;  %s252_s20 = smov [#allocation2]   ;;  %s40_s16 = int_to_ptr.vmem [resolvable:$true] %s39_s16 }
   0x4   :  { %42 = dma.hbm_to_vmem [thread:$0]  %s38_s14, 32, %s40_s16, [#allocation6]  }
   0x5   :  { %s23_s21 = sshll.u32 %s252_s20, 4  ;;  %s53_s24 = sshll.u32 %s292_s2, 4  ;;  %s24_s21 = int_to_ptr.vmem [resolvable:$true] %s23_s21  ;;  %s54_s24 = int_to_ptr.hbm [resolvable:$true] %s53_s24 }
   0x6   :  { %26 = dma.hbm_to_vmem [thread:$0]  %s22_s19, 32, %s24_s21, [#allocation3]  }
   0x7   :  { %s253_s1 = smov [#allocation7]  }
   0x8   :  { %s55_s25 = sshll.u32 %s253_s1, 4  ;;  %s56_s25 = int_to_ptr.vmem [resolvable:$true] %s55_s25 }
   0x9   :  { %58 = dma.hbm_to_vmem [thread:$0]  %s54_s24, 32, %s56_s25, [#allocation6]  }
   0xa   :  { %245 = dma.done.wait [#allocation3], 32  }
   0xb   :  { %246 = vsyncadd [#allocation3], 4294967264 }
   0xc   :  { %247 = dma.done.wait [#allocation6], 64  }
   0xd   :  { %248 = vsyncadd [#allocation6], 4294967232  ;;  %vm84_vm0 = vcmask 0   ;;  %v254_v0 = vmov 0.0   ;;  %v96_v1 = vlaneseq  ;;  %v86_v2 = vld [vmem:[#allocation2] sm:$0x3] }
   0xe   :  { %85 = vst.msk [vmem:[#allocation8] sm:$0x1] %vm84_vm0, %v254_v0  ;;  %v87_v3 = vld [vmem:[#allocation5] sm:$0x3]  ;;  %v88_v4 = vld [vmem:[#allocation7] sm:$0x3] }
   0xf   :  { %v89_v5 = vmul.f32 2.0, %v86_v2  ;;  %v97_v6 = vshrl.u32 %v96_v1, 7  ;;  %vm103_vm2 = vcmask 1041408   ;;  %s255_s0 = smov [#allocation8]   ;;  %s125_s28 = sshll.u32 %s293_s3, 4  ;;  %s126_s28 = int_to_ptr.hbm [resolvable:$true] %s125_s28 }
  0x10   :  { %s123_s2 = sshll.u32 %s255_s0, 4  ;;  %s124_s2 = int_to_ptr.vmem [resolvable:$true] %s123_s2 }
  0x11   :  { %v90_v7 = vmul.f32 %v89_v5, %v88_v4  ;;  %v91_v8 = vsub.f32 %v87_v3, %v89_v5  ;;  %vm100_vm1 = vcmp.lt.s32.totalorder %v97_v6, 2 }
  0x13   :  { %v92_v9 = vmax.f32 %v91_v8, 0.0 }
  0x15   :  { %v93_v10 = vadd.f32 %v92_v9, %v90_v7  ;;  %v102_v20 = vld [vmem:[#allocation8] sm:$0x1] }
  0x17   :  { %v101_v11 = vsel %vm100_vm1, %v93_v10, 0.0 }
  0x18   :  { %v104_v12 = vsel %vm103_vm2, %v101_v11, 0.0 }
  0x19   :  { %105 = vadd.xlane.f32.xlu0 %v104_v12 }
  0x8c   :  { %v106_v13 = vpop.xlane.xlu0 %105 }
  0x8d   :  { %v107_v14 = vrot.slane %v106_v13, 4 }
  0x8f   :  { %v108_v15 = vadd.f32 %v107_v14, %v106_v13 }
  0x91   :  { %v109_v16 = vrot.slane %v108_v15, 2 }
  0x93   :  { %v110_v17 = vadd.f32 %v109_v16, %v108_v15 }
  0x95   :  { %v111_v18 = vrot.slane %v110_v17, 1 }
  0x97   :  { %v112_v19 = vadd.f32 %v111_v18, %v110_v17 }
  0x99   :  { %142 = vpush %v112_v19 }
  0xca   :  { %s143_s29 = spop %142 }
  0xcb   :  { %v114_v21 = vstv %s143_s29 }
  0xcc   :  { %v115_v22 = vadd.f32 %v114_v21, %v102_v20 }
  0xce   :  { %117 = vst.msk [vmem:[#allocation8] sm:$0x1] %vm84_vm0, %v115_v22 }
  0xcf   :  { %128 = dma.vmem_to_hbm [thread:$0]  %s124_s2, 16, %s126_s28, [#allocation4]  }
  0xd0   :  { %249 = dma.done.wait [#allocation4], 16  }
  0xd1   :  { %250 = vsyncadd [#allocation4], 4294967280 }
  0xd2   :  { %133 = vsyncpa [#allocation3], 1 }
  0xd3   :  { %134 = vsyncpa [#allocation6], 1 }
  0xd4   :  { %135 = vsyncpa [#allocation4], 1 }

</bundles_post_ra>
